<compile_context>
chip_gen: v5e
topology: v5e:2x2
jax: 0.10.0
libtpu: 0.0.40
codegen_flags: <defaults>
</compile_context>

<pallas_src>
import functools

import jax
import jax.numpy as jnp
from jax import lax
from jax.experimental import pallas as pl
from jax.experimental.pallas import tpu as pltpu


def _topk_partial_kernel(x_ref, t_ref, tgt_ref, kvec_ref, part_ref, rank_acc,
                         *, total_batch, tile_batch, tile_classes,
                         num_classes):
    """Rank-based hit counting, tiled over (batch, classes).

    rank = #(x > t) + #((x == t) & (col < target))   (lowest-index tie-break,
    matches lax.top_k);  hit@k = rank < k.
    """
    bi = pl.program_id(0)
    ci = pl.program_id(1)

    @pl.when(ci == 0)
    def _():
        rank_acc[...] = jnp.zeros_like(rank_acc)

    x = x_ref[...]                                   # (TB, TC), native dtype
    t = t_ref[...]                                   # (TB, 1),  native dtype
    tgt = tgt_ref[...]                               # (TB, 1),  int32

    col = tile_classes * ci + lax.broadcasted_iota(
        jnp.int32, (tile_batch, tile_classes), 1)    # global class index
    before = (x > t) | ((x == t) & (col < tgt))      # (TB, TC) bool
    if num_classes % tile_classes != 0:
        # Ragged last class tile: mask padded lanes.
        before = before & (col < num_classes)
    rank_acc[...] += jnp.sum(before.astype(jnp.int32), axis=1, keepdims=True)

    @pl.when(ci == pl.num_programs(1) - 1)
    def _():
        rank = rank_acc[...]                                         # (TB, 1)
        row = lax.broadcasted_iota(jnp.int32, (tile_batch, 1), 0)
        valid = (bi * tile_batch + row) < total_batch                # (TB, 1)
        hits = (valid & (rank < kvec_ref[...])).astype(jnp.int32)    # (TB, K)
        part_ref[0] = jnp.sum(hits, axis=0, keepdims=True)           # (1, K)


def topk_accuracy(output, target, topk=(1,), block_rows=None,
                  block_classes=None):
    """Pallas equivalent of TopkAccuracy.forward(output, target).

    output: (B, C) float logits (any float dtype; compared in native dtype)
    target: (B,)   integer labels
    returns: list of (1,) float32 arrays, one per k in `topk` (percent).
    """
    batch, num_classes = output.shape
    topk = tuple(int(k) for k in topk)
    num_k = len(topk)
    dtype_size = jnp.dtype(output.dtype).itemsize

    target2d = target.reshape(batch, 1).astype(jnp.int32)
    # Target-class logit per row: tiny B-element gather in XLA; removes the
    # per-element masked-max pass from the kernel and enables class tiling.
    tgt_logit = jnp.take_along_axis(output, target2d, axis=1)        # (B, 1)
    kvec = jnp.asarray(topk, dtype=jnp.int32).reshape(1, num_k)

    # ---- class (lane) tile: full C if modest, else 128-aligned chunks ----
    max_tc = block_classes if block_classes is not None else 8192
    if num_classes <= max_tc:
        tc = num_classes
    else:
        tc = max(128, (max_tc // 128) * 128)
    num_c_tiles = pl.cdiv(num_classes, tc)

    # ---- batch (sublane) tile: sized by bytes (~2 MiB input tile) ----
    target_tile_bytes = 2 * 1024 * 1024
    tb = max(8, (target_tile_bytes // (tc * dtype_size) // 8) * 8)
    if batch > 8:
        # Keep >= 2 batch tiles so the "parallel" axis can shard across both
        # TensorCores on v7x (no-op on single-TC v5e/v6e).
        half = max(8, (pl.cdiv(batch, 2) // 8) * 8)
        tb = min(tb, half)
    if block_rows is not None:
        tb = min(tb, max(8, (block_rows // 8) * 8))
    tb = min(tb, batch)
    num_b_tiles = pl.cdiv(batch, tb)

    kernel = functools.partial(
        _topk_partial_kernel, total_batch=batch, tile_batch=tb,
        tile_classes=tc, num_classes=num_classes)

    partials = pl.pallas_call(
        kernel,
        out_shape=jax.ShapeDtypeStruct((num_b_tiles, 1, num_k), jnp.int32),
        grid_spec=pltpu.PrefetchScalarGridSpec(
            num_scalar_prefetch=0,
            grid=(num_b_tiles, num_c_tiles),
            in_specs=[
                pl.BlockSpec((tb, tc), lambda bi, ci: (bi, ci)),
                pl.BlockSpec((tb, 1), lambda bi, ci: (bi, 0)),
                pl.BlockSpec((tb, 1), lambda bi, ci: (bi, 0)),
                pl.BlockSpec((1, num_k), lambda bi, ci: (0, 0)),
            ],
            out_specs=pl.BlockSpec((1, 1, num_k), lambda bi, ci: (bi, 0, 0)),
            scratch_shapes=[pltpu.VMEM((tb, 1), jnp.int32)],
        ),
        compiler_params=pltpu.CompilerParams(
            dimension_semantics=("parallel", "arbitrary"),
            vmem_limit_bytes=48 * 1024 * 1024),
    )(output, tgt_logit, target2d, kvec)

    # Global reduction + scale by the GLOBAL batch size (tiny XLA reduce).
    counts = jnp.sum(partials.reshape(num_b_tiles, num_k), axis=0)
    res = counts.astype(jnp.float32) * (100.0 / batch)
    return [res[j].reshape(1) for j in range(num_k)]


def _reference_topk_accuracy(output, target, topk):
    """Pure-JAX reference mirroring the PyTorch module."""
    maxk = max(topk)
    _, pred = lax.top_k(output, maxk)                          # (B, maxk)
    correct = pred.T == target.reshape(1, -1)                  # (maxk, B)
    res = []
    for k in topk:
        res.append(jnp.sum(correct[:k].astype(jnp.float32)).reshape(1)
                   * (100.0 / output.shape[0]))
    return res


if __name__ == "__main__":
    key = jax.random.PRNGKey(0)
    topk = (1, 5)
    keys = jax.random.split(key, 6)

    # Case 1: single tile on both axes (whole problem fits one block).
    b1, c1 = 8, 32
    logits1 = jax.random.normal(keys[0], (b1, c1), dtype=jnp.float32)
    labels1 = jax.random.randint(keys[1], (b1,), 0, c1, dtype=jnp.int32)
    out1 = [jax.block_until_ready(o)
            for o in topk_accuracy(logits1, labels1, topk=topk)]
    ref1 = _reference_topk_accuracy(logits1, labels1, topk)
    for got, want in zip(out1, ref1):
        assert jnp.allclose(got, want, atol=1e-4), (got, want)

    # Case 2: multi batch tiles with a ragged last tile (row masking).
    b2, c2 = 50, 32
    logits2 = jax.random.normal(keys[2], (b2, c2), dtype=jnp.float32)
    labels2 = jax.random.randint(keys[3], (b2,), 0, c2, dtype=jnp.int32)
    out2 = [jax.block_until_ready(o)
            for o in topk_accuracy(logits2, labels2, topk=topk, block_rows=16)]
    ref2 = _reference_topk_accuracy(logits2, labels2, topk)
    for got, want in zip(out2, ref2):
        assert jnp.allclose(got, want, atol=1e-4), (got, want)

    # Case 3: bf16 logits + class tiling with ragged class and batch tiles.
    b3, c3 = 50, 160
    logits3 = jax.random.normal(keys[4], (b3, c3), dtype=jnp.bfloat16)
    labels3 = jax.random.randint(keys[5], (b3,), 0, c3, dtype=jnp.int32)
    out3 = [jax.block_until_ready(o)
            for o in topk_accuracy(logits3, labels3, topk=topk,
                                   block_rows=16, block_classes=128)]
    ref3 = _reference_topk_accuracy(logits3, labels3, topk)
    for got, want in zip(out3, ref3):
        assert jnp.allclose(got, want, atol=1e-4), (got, want)

    print("KERNEL_OK")
</pallas_src>

<mosaic_0001>
module attributes {stable_mosaic.version = 11 : i64} {
  func.func @_topk_partial_kernel(%arg0: i32, %arg1: i32, %arg2: memref<8x32xf32, #tpu.memory_space<vmem>>, %arg3: memref<8x1xf32, #tpu.memory_space<vmem>>, %arg4: memref<8x1xi32, #tpu.memory_space<vmem>>, %arg5: memref<1x2xi32, #tpu.memory_space<vmem>>, %arg6: memref<1x1x2xi32, #tpu.memory_space<vmem>>, %arg7: memref<8x1xi32, #tpu.memory_space<vmem>>) attributes {dimension_semantics = [#tpu.dimension_semantics<parallel>, #tpu.dimension_semantics<arbitrary>], iteration_bounds = array<i64: 1, 1>, scalar_prefetch = 0 : i64, scratch_operands = 1 : i64, tpu.core_type = #tpu.core_type<tc>, window_params = [{transform_indices = @transform_0, window_bounds = array<i64: 8, 32>}, {transform_indices = @transform_1, window_bounds = array<i64: 8, 1>}, {transform_indices = @transform_2, window_bounds = array<i64: 8, 1>}, {pipeline_mode = #tpu.pipeline_mode<synchronous>, transform_indices = @transform_3, window_bounds = array<i64: 1, 2>}, {transform_indices = @transform_4, window_bounds = array<i64: 1, 1, 2>}]} {
    %c0_i32 = arith.constant 0 : i32
    %0 = arith.cmpi eq, %arg1, %c0_i32 : i32
    %1 = arith.extui %0 : i1 to i32
    %c0_i32_0 = arith.constant 0 : i32
    %2 = arith.cmpi ne, %1, %c0_i32_0 : i32
    scf.if %2 {
      %c0_i32_12 = arith.constant 0 : i32
      %27 = vector.broadcast %c0_i32_12 : i32 to vector<8x1xi32>
      %c0_13 = arith.constant 0 : index
      %c0_14 = arith.constant 0 : index
      %28 = vector.load %arg7[%c0_13, %c0_14] : memref<8x1xi32, #tpu.memory_space<vmem>>, vector<8x1xi32>
      tpu.vector_store %arg7[%c0_13, %c0_14], %27 {strides = array<i32>} : memref<8x1xi32, #tpu.memory_space<vmem>>, vector<8x1xi32>,
    } else {
    }
    %c0 = arith.constant 0 : index
    %c0_1 = arith.constant 0 : index
    %3 = vector.load %arg2[%c0, %c0_1] : memref<8x32xf32, #tpu.memory_space<vmem>>, vector<8x32xf32>
    %c0_2 = arith.constant 0 : index
    %c0_3 = arith.constant 0 : index
    %4 = vector.load %arg3[%c0_2, %c0_3] : memref<8x1xf32, #tpu.memory_space<vmem>>, vector<8x1xf32>
    %c0_4 = arith.constant 0 : index
    %c0_5 = arith.constant 0 : index
    %5 = vector.load %arg4[%c0_4, %c0_5] : memref<8x1xi32, #tpu.memory_space<vmem>>, vector<8x1xi32>
    %c32_i32 = arith.constant 32 : i32
    %6 = arith.muli %c32_i32, %arg1 : i32
    %7 = tpu.iota {dimensions = array<i32: 1>} : vector<8x32xi32>
    %8 = vector.broadcast %6 : i32 to vector<8x32xi32>
    %9 = arith.addi %8, %7 : vector<8x32xi32>
    %10 = vector.broadcast %4 : vector<8x1xf32> to vector<8x32xf32>
    %11 = arith.cmpf ogt, %3, %10 : vector<8x32xf32>
    %12 = vector.broadcast %4 : vector<8x1xf32> to vector<8x32xf32>
    %13 = arith.cmpf oeq, %3, %12 : vector<8x32xf32>
    %14 = vector.broadcast %5 : vector<8x1xi32> to vector<8x32xi32>
    %15 = arith.cmpi slt, %9, %14 : vector<8x32xi32>
    %16 = arith.andi %13, %15 : vector<8x32xi1>
    %17 = arith.ori %11, %16 : vector<8x32xi1>
    %c0_6 = arith.constant 0 : index
    %c0_7 = arith.constant 0 : index
    %18 = vector.load %arg7[%c0_6, %c0_7] : memref<8x1xi32, #tpu.memory_space<vmem>>, vector<8x1xi32>
    %19 = arith.extui %17 : vector<8x32xi1> to vector<8x32xi32>
    %cst = arith.constant dense<0> : vector<8xi32>
    %20 = vector.multi_reduction <add>, %19, %cst [1] : vector<8x32xi32> to vector<8xi32>
    %21 = vector.shape_cast %20 : vector<8xi32> to vector<8x1xi32>
    %22 = arith.addi %18, %21 : vector<8x1xi32>
    %c0_8 = arith.constant 0 : index
    %c0_9 = arith.constant 0 : index
    %23 = vector.load %arg7[%c0_8, %c0_9] : memref<8x1xi32, #tpu.memory_space<vmem>>, vector<8x1xi32>
    tpu.vector_store %arg7[%c0_8, %c0_9], %22 {strides = array<i32>} : memref<8x1xi32, #tpu.memory_space<vmem>>, vector<8x1xi32>,
    %c0_i32_10 = arith.constant 0 : i32
    %24 = arith.cmpi eq, %arg1, %c0_i32_10 : i32
    %25 = arith.extui %24 : i1 to i32
    %c0_i32_11 = arith.constant 0 : i32
    %26 = arith.cmpi ne, %25, %c0_i32_11 : i32
    scf.if %26 {
      %c0_12 = arith.constant 0 : index
      %c0_13 = arith.constant 0 : index
      %27 = vector.load %arg7[%c0_12, %c0_13] : memref<8x1xi32, #tpu.memory_space<vmem>>, vector<8x1xi32>
      %28 = tpu.iota {dimensions = array<i32: 0>} : vector<8x1xi32>
      %c8_i32 = arith.constant 8 : i32
      %29 = arith.muli %arg0, %c8_i32 : i32
      %30 = vector.broadcast %29 : i32 to vector<8x1xi32>
      %31 = arith.addi %30, %28 : vector<8x1xi32>
      %c8_i32_14 = arith.constant 8 : i32
      %32 = vector.broadcast %c8_i32_14 : i32 to vector<8x1xi32>
      %33 = arith.cmpi slt, %31, %32 : vector<8x1xi32>
      %c0_15 = arith.constant 0 : index
      %c0_16 = arith.constant 0 : index
      %34 = vector.load %arg5[%c0_15, %c0_16] : memref<1x2xi32, #tpu.memory_space<vmem>>, vector<1x2xi32>
      %35 = vector.broadcast %27 : vector<8x1xi32> to vector<8x2xi32>
      %36 = vector.broadcast %34 : vector<1x2xi32> to vector<8x2xi32>
      %37 = arith.cmpi slt, %35, %36 : vector<8x2xi32>
      %38 = vector.broadcast %33 : vector<8x1xi1> to vector<8x2xi1>
      %39 = arith.andi %38, %37 : vector<8x2xi1>
      %40 = arith.extui %39 : vector<8x2xi1> to vector<8x2xi32>
      %cst_17 = arith.constant dense<0> : vector<2xi32>
      %41 = vector.multi_reduction <add>, %40, %cst_17 [0] : vector<8x2xi32> to vector<2xi32>
      %42 = vector.shape_cast %41 : vector<2xi32> to vector<1x2xi32>
      %c0_18 = arith.constant 0 : index
      %c0_19 = arith.constant 0 : index
      %c0_20 = arith.constant 0 : index
      %43 = vector.load %arg6[%c0_18, %c0_19, %c0_20] : memref<1x1x2xi32, #tpu.memory_space<vmem>>, vector<1x1x2xi32>
      %44 = vector.shape_cast %43 : vector<1x1x2xi32> to vector<1x2xi32>
      %45 = vector.shape_cast %42 : vector<1x2xi32> to vector<1x1x2xi32>
      tpu.vector_store %arg6[%c0_18, %c0_19, %c0_20], %45 {strides = array<i32>} : memref<1x1x2xi32, #tpu.memory_space<vmem>>, vector<1x1x2xi32>,
    } else {
    }
    return
  }
  func.func @transform_0(%arg0: i32, %arg1: i32) -> (i32, i32) {
    %c0_i32 = arith.constant 0 : i32
    return %arg0, %arg1 : i32, i32
  }
  func.func @transform_1(%arg0: i32, %arg1: i32) -> (i32, i32) {
    %c0_i32 = arith.constant 0 : i32
    %c0_i32_0 = arith.constant 0 : i32
    return %arg0, %c0_i32 : i32, i32
  }
  func.func @transform_2(%arg0: i32, %arg1: i32) -> (i32, i32) {
    %c0_i32 = arith.constant 0 : i32
    %c0_i32_0 = arith.constant 0 : i32
    return %arg0, %c0_i32 : i32, i32
  }
  func.func @transform_3(%arg0: i32, %arg1: i32) -> (i32, i32) {
    %c0_i32 = arith.constant 0 : i32
    %c0_i32_0 = arith.constant 0 : i32
    %c0_i32_1 = arith.constant 0 : i32
    return %c0_i32, %c0_i32_0 : i32, i32
  }
  func.func @transform_4(%arg0: i32, %arg1: i32) -> (i32, i32, i32) {
    %c0_i32 = arith.constant 0 : i32
    %c0_i32_0 = arith.constant 0 : i32
    %c0_i32_1 = arith.constant 0 : i32
    return %arg0, %c0_i32, %c0_i32_0 : i32, i32, i32
  }
}

</mosaic_0001>

<bundles_post_ra>
// kernel: tpu_custom_call.1
= control target key start
LH: loop header
LB: loop body
LE: loop exit
PB: predicated region body
PF: predicated region fallthrough
CT: control target
= control target key end

     0   :  { %vm22_vm0 = vcmask 7168   ;;  %v141_v1 = vmov 0   ;;  %s185_s0 = inlined_call_operand.vmem [shape: f32[8,32], index: 0, kind: input, shape index: {}]   ;;  %s186_s1 = inlined_call_operand.vmem [shape: f32[8,1], index: 1, kind: input, shape index: {}]   ;;  %s187_s2 = inlined_call_operand.vmem [shape: s32[8,1], index: 2, kind: input, shape index: {}]   ;;  %s188_s3 = inlined_call_operand.vmem [shape: s32[1,2], index: 3, kind: input, shape index: {}]   ;;  %s189_s4 = inlined_call_operand.hbm [shape: s32[1,1,2], index: 4, kind: output, shape index: {}]  }
   0x1   :  { %v25_v0 = vld [vmem:[%s186_s1] sm:$0xff]  ;;  %112 = vset.pattern.permute.xlu0 %v141_v1  ;;  %23 = vst.msk [vmem:[#allocation2] sm:$0xff] %vm22_vm0, %v141_v1  ;;  %113 = vset.pattern.permute.xlu2 %v141_v1 }
   0x2   :  { %9 = vsyncpa [#allocation4], 0  ;;  %34 = vperm.xlu0 %112, %v25_v0   ;;  %v26_v2 = vld [vmem:[%s187_s2] sm:$0xff]  ;;  %v28_v4 = vlaneseq  ;;  %vm47_vm5 = vcmask 261120   ;;  %vm84_vm7 = vcmask 15360   ;;  %s142_s2 = smov [#allocation3]  }
   0x3   :  { %v24_v6 = vld [vmem:[%s185_s0] sm:$0xff]  ;;  %s99_s21 = sshll.u32 %s142_s2, 4  ;;  %s101_s24 = sshll.u32 %s189_s4, 4  ;;  %vm92_vm9 = vcmask 8192   ;;  %s100_s21 = int_to_ptr.vmem [resolvable:$true] %s99_s21  ;;  %s102_s24 = int_to_ptr.hbm [resolvable:$true] %s101_s24 }
   0x4   :  { %v29_v5 = vand.u32 127, %v28_v4  ;;  %v114_v23 = vld [vmem:[%s188_s3] ss:$0 sm:$0xff] }
   0x8   :  { %v45_v19 = vld [vmem:[#allocation2] sm:$0xff] }
   0xa   :  { %40 = vperm.xlu0 %112, %v26_v2  }
  0x74   :  { %v35_v3 = vpop.permute.xlu0 %34 }
  0x75   :  { %vm38_vm1 = vcmp.eq.f32.partialorder %v24_v6, %v35_v3  ;;  %vm37_vm3 = vcmp.gt.f32.partialorder %v24_v6, %v35_v3 }
  0x7c   :  { %v41_v7 = vpop.permute.xlu0 %40 }
  0x7d   :  { %vm42_vm2 = vcmp.lt.s32.totalorder %v29_v5, %v41_v7 }
  0x7e   :  { %vm43_vm4 = vmand %vm38_vm1, %vm42_vm2 }
  0x7f   :  { %vm44_vm6 = vmor %vm37_vm3, %vm43_vm4 }
  0x80   :  { %v46_v8 = vsel %vm44_vm6, 1, %v141_v1 }
  0x81   :  { %v48_v9 = vsel %vm47_vm5, %v46_v8, 0 }
  0x82   :  { %v50_v10 = vshrl.u32 %v48_v9, 16  ;;  %v49_v12 = vand.u32 65535, %v48_v9 }
  0x84   :  { %v52_v11 = vcvt.s32.f32 %v50_v10  ;;  %v51_v13 = vcvt.s32.f32 %v49_v12 }
  0x86   :  { %55 = vadd.xlane.f32.xlu1 %v52_v11 }
  0x8e   :  { %53 = vadd.xlane.f32.xlu1 %v51_v13 }
  0xf9   :  { %v56_v14 = vpop.xlane.xlu1 %55 }
  0xfa   :  { %v58_v15 = vcvt.f32.s32 %v56_v14 }
  0xfc   :  { %v59_v17 = vshll.u32 %v58_v15, 16 }
 0x101   :  { %v54_v16 = vpop.xlane.xlu1 %53 }
 0x102   :  { %v57_v18 = vcvt.f32.s32 %v54_v16 }
 0x104   :  { %v60_v20 = vadd.s32 %v59_v17, %v57_v18 }
 0x106   :  { %v61_v21 = vadd.s32 %v60_v20, %v45_v19 }
 0x108   :  { %63 = vst.msk [vmem:[#allocation2] sm:$0xff] %vm22_vm0, %v61_v21 }
 0x10f   :  { %v67_v22 = vld [vmem:[#allocation2] sm:$0xff] }
 0x110   :  { %76 = vperm.xlu2 %113, %v67_v22  }
 0x16a   :  { %v77_v24 = vpop.permute.xlu2 %76 }
 0x16b   :  { %vm79_vm8 = vcmp.lt.s32.totalorder %v77_v24, %v114_v23 }
 0x16c   :  { %v83_v25 = vsel %vm79_vm8, 1, %v141_v1 }
 0x16d   :  { %v85_v26 = vsel %vm84_vm7, %v83_v25, 0 }
 0x16e   :  { %v86_v27 = vrot.slane %v85_v26, 4 }
 0x170   :  { %v87_v28 = vadd.s32 %v86_v27, %v85_v26 }
 0x172   :  { %v88_v29 = vrot.slane %v87_v28, 2 }
 0x174   :  { %v89_v30 = vadd.s32 %v88_v29, %v87_v28 }
 0x176   :  { %v90_v31 = vrot.slane %v89_v30, 1 }
 0x178   :  { %v91_v32 = vadd.s32 %v90_v31, %v89_v30 }
 0x17a   :  { %93 = vst.msk [vmem:[#allocation3] sm:$0x1] %vm92_vm9, %v91_v32 }
 0x17b   :  { %104 = dma.vmem_to_hbm [thread:$0]  %s100_s21, 16, %s102_s24, [#allocation4]  }
 0x17c   :  { %139 = dma.done.wait [#allocation4], 16  }
 0x17d   :  { %140 = vsyncadd [#allocation4], 4294967280 }
 0x17e   :  { %109 = vsyncpa [#allocation4], 1 }

</bundles_post_ra>
